<compile_context>
chip_gen: v7x
topology: tpu7x:2x2x1
jax: 0.10.0
libtpu: 0.0.40
codegen_flags: <defaults>
</compile_context>

<pallas_src>
import math

import jax
import jax.numpy as jnp
from jax import lax
from jax.experimental import pallas as pl
from jax.experimental.pallas import tpu as pltpu


def _attn_kernel(q_ref, k_ref, v_ref,
                 wqk_ref, bqk_ref, wvo_ref, bo_ref,
                 out_ref):
    """One batch element: per-frame attention on raw K/V, summed over frames.

    Shapes seen by the kernel (size-1 batch dims squeezed away):
      q_ref:   (L, E)
      k_ref:   (F, L, E)   v_ref: (F, L, E)        (raw, un-projected)
      wqk_ref: (E, F*E)    bqk_ref: (1, F*E)       (scale, Wq, Wk^T, bq folded)
      wvo_ref: (F, E, E)                           (Wv @ Wo per frame)
      bo_ref:  (1, E)                              (sum_f bv_f Wo_f + bo_f)
      out_ref: (L, E)
    """
    F = k_ref.shape[0]
    L, E = q_ref.shape

    q = q_ref[...]                                                    # (L, E)

    # Fused effective-Q projection across all frames (one MXU op).
    q_all = jnp.dot(q, wqk_ref[...],
                    preferred_element_type=jnp.float32) + bqk_ref[...]  # (L, F*E)

    acc = jnp.zeros((L, E), jnp.float32)
    for f in range(F):  # F is small & static -> fully unrolled at trace time
        q_f = q_all[:, f * E:(f + 1) * E]                             # (L, E)

        # Scores against the *raw* keys: contract last dims (no transpose copy).
        s = lax.dot_general(q_f, k_ref[f], (((1,), (1,)), ((), ())),
                            preferred_element_type=jnp.float32)       # (L, S)

        m = jnp.max(s, axis=-1, keepdims=True)
        p = jnp.exp(s - m)
        denom = jnp.sum(p, axis=-1, keepdims=True)                    # (L, 1)

        # V projected straight through the fused Wv@Wo weight.
        v_f = jnp.dot(v_ref[f], wvo_ref[f],
                      preferred_element_type=jnp.float32)             # (L, E)
        o_f = jnp.dot(p, v_f, preferred_element_type=jnp.float32)     # (L, E)

        # Deferred softmax normalisation: EUP reciprocal + (L,E) multiply.
        acc = acc + o_f * pl.reciprocal(denom, approx=True)

    out_ref[...] = (acc + bo_ref[...]).astype(out_ref.dtype)


def attention_layer_pallas(q_tok, k_tok, v_tok, params):
    """q_tok: (B, L, E); k_tok/v_tok: (F, B, L, E). Returns (B, L, E)."""
    B, L, E = q_tok.shape
    F = k_tok.shape[0]
    scale = 1.0 / math.sqrt(E)

    wq, wk, wv, wo = params["wq"], params["wk"], params["wv"], params["wo"]  # (F, E, E)
    bq, bv, bo = params["bq"], params["bv"], params["bo"]                    # (F, 1, E)
    # params["bk"] drops out: it adds a per-query-row constant to the scores,
    # which softmax is invariant to.

    # --- one-time weight pre-fusion (XLA wrapper, not in-kernel) -------------
    wqk = scale * jnp.einsum("fij,fkj->fik", wq, wk)       # (F, E, E) = s*Wq@Wk^T
    bqk = scale * jnp.einsum("fij,fkj->fik", bq, wk)       # (F, 1, E) = s*bq@Wk^T
    wqk_cat = wqk.transpose(1, 0, 2).reshape(E, F * E)     # (E, F*E)
    bqk_cat = bqk.transpose(1, 0, 2).reshape(1, F * E)     # (1, F*E)
    wvo = jnp.einsum("fij,fjk->fik", wv, wo)               # (F, E, E) = Wv@Wo
    bo_eff = jnp.sum(jnp.einsum("fij,fjk->fik", bv, wo) + bo, axis=0)  # (1, E)

    # Weights use grid-constant index maps -> DMA'd once, VMEM-resident.
    const2 = lambda b: (0, 0)
    const3 = lambda b: (0, 0, 0)

    out = pl.pallas_call(
        _attn_kernel,
        out_shape=jax.ShapeDtypeStruct((B, L, E), q_tok.dtype),
        grid_spec=pltpu.PrefetchScalarGridSpec(
            num_scalar_prefetch=0,
            grid=(B,),
            in_specs=[
                pl.BlockSpec((None, L, E), lambda b: (b, 0, 0)),        # q
                pl.BlockSpec((F, None, L, E), lambda b: (0, b, 0, 0)),  # k (raw)
                pl.BlockSpec((F, None, L, E), lambda b: (0, b, 0, 0)),  # v (raw)
                pl.BlockSpec((E, F * E), const2),                       # wqk_cat
                pl.BlockSpec((1, F * E), const2),                       # bqk_cat
                pl.BlockSpec((F, E, E), const3),                        # wvo
                pl.BlockSpec((1, E), const2),                           # bo_eff
            ],
            out_specs=pl.BlockSpec((None, L, E), lambda b: (b, 0, 0)),
        ),
        compiler_params=pltpu.CompilerParams(
            dimension_semantics=("parallel",)),   # batch splits across v7x's 2 TCs
    )(q_tok, k_tok, v_tok, wqk_cat, bqk_cat, wvo, bo_eff)
    return out


def attention_layer_forward(q_nchw, ks_nfchw, vs_nfchw, params):
    """Mirrors AttentionLayer.forward with reduce='sum', num_heads=1.

    q_nchw:  (B, C, H, W)
    ks/vs:   (B, F, C, H, W)
    returns: (B, C, H, W)
    """
    if ks_nfchw.ndim == 4:  # unbatched path of the PyTorch module
        q_nchw = q_nchw[None]
        ks_nfchw = ks_nfchw[None]
        vs_nfchw = vs_nfchw[None]

    B, C, H, W = q_nchw.shape
    F = ks_nfchw.shape[1]
    L = H * W

    # q.flatten(2,3).permute(2,0,1) -> (L, B, C); we keep batch-major (B, L, C)
    q_tok = q_nchw.reshape(B, C, L).transpose(0, 2, 1)
    # ks.flatten(3,4).permute(1,3,0,2) -> (F, L, B, C); we keep (F, B, L, C)
    k_tok = ks_nfchw.reshape(B, F, C, L).transpose(1, 0, 3, 2)
    v_tok = vs_nfchw.reshape(B, F, C, L).transpose(1, 0, 3, 2)

    out_tok = attention_layer_pallas(q_tok, k_tok, v_tok, params)  # (B, L, C)

    # (L,B,C).view(h,w,b,c).permute(2,3,0,1) == (B,L,C) -> (B,C,H,W)
    return out_tok.reshape(B, H, W, C).transpose(0, 3, 1, 2)


def attention_layer_reference(q_nchw, ks_nfchw, vs_nfchw, params):
    """Pure-JAX reference of the original (unfused) math, for correctness."""
    B, C, H, W = q_nchw.shape
    F = ks_nfchw.shape[1]
    L = H * W
    q_tok = q_nchw.reshape(B, C, L).transpose(0, 2, 1)
    k_tok = ks_nfchw.reshape(B, F, C, L).transpose(1, 0, 3, 2)
    v_tok = vs_nfchw.reshape(B, F, C, L).transpose(1, 0, 3, 2)

    acc = jnp.zeros((B, L, C), jnp.float32)
    scale = 1.0 / math.sqrt(C)
    for f in range(F):
        Q = q_tok @ params["wq"][f] + params["bq"][f]          # (B, L, C)
        K = k_tok[f] @ params["wk"][f] + params["bk"][f]       # (B, L, C)
        V = v_tok[f] @ params["wv"][f] + params["bv"][f]
        s = jnp.einsum("blc,bsc->bls", Q * scale, K)
        p = jax.nn.softmax(s, axis=-1)
        o = jnp.einsum("bls,bsc->blc", p, V)
        acc = acc + o @ params["wo"][f] + params["bo"][f]
    return acc.reshape(B, H, W, C).transpose(0, 3, 1, 2)


def init_params(key, num_frames, embed_dim):
    keys = jax.random.split(key, 8)
    s = 1.0 / math.sqrt(embed_dim)
    F, E = num_frames, embed_dim
    return {
        "wq": jax.random.uniform(keys[0], (F, E, E), jnp.float32, -s, s),
        "wk": jax.random.uniform(keys[1], (F, E, E), jnp.float32, -s, s),
        "wv": jax.random.uniform(keys[2], (F, E, E), jnp.float32, -s, s),
        "wo": jax.random.uniform(keys[3], (F, E, E), jnp.float32, -s, s),
        "bq": jax.random.uniform(keys[4], (F, 1, E), jnp.float32, -s, s),
        "bk": jax.random.uniform(keys[5], (F, 1, E), jnp.float32, -s, s),
        "bv": jax.random.uniform(keys[6], (F, 1, E), jnp.float32, -s, s),
        "bo": jax.random.uniform(keys[7], (F, 1, E), jnp.float32, -s, s),
    }


if __name__ == "__main__":
    B, F, C, H, W = 2, 2, 32, 8, 8   # batch, num_frames, embed_dim, spatial

    key = jax.random.PRNGKey(0)
    kq, kk, kv, kp = jax.random.split(key, 4)
    q = jax.random.normal(kq, (B, C, H, W), jnp.float32)
    ks = jax.random.normal(kk, (B, F, C, H, W), jnp.float32)
    vs = jax.random.normal(kv, (B, F, C, H, W), jnp.float32)
    params = init_params(kp, F, C)

    out = jax.block_until_ready(attention_layer_forward(q, ks, vs, params))
    ref = jax.block_until_ready(attention_layer_reference(q, ks, vs, params))

    assert out.shape == (B, C, H, W), out.shape
    # approx EUP reciprocal introduces ~2^-12 relative error -> 2e-3 tolerance
    assert jnp.allclose(out, ref, rtol=2e-3, atol=2e-3), float(
        jnp.max(jnp.abs(out - ref)))

    print("KERNEL_OK")
</pallas_src>

<mosaic_0001>
module attributes {stable_mosaic.version = 11 : i64} {
  func.func @_attn_kernel(%arg0: i32, %arg1: memref<1x64x32xf32, #tpu.memory_space<vmem>>, %arg2: memref<2x1x64x32xf32, #tpu.memory_space<vmem>>, %arg3: memref<2x1x64x32xf32, #tpu.memory_space<vmem>>, %arg4: memref<32x64xf32, #tpu.memory_space<vmem>>, %arg5: memref<1x64xf32, #tpu.memory_space<vmem>>, %arg6: memref<2x32x32xf32, #tpu.memory_space<vmem>>, %arg7: memref<1x32xf32, #tpu.memory_space<vmem>>, %arg8: memref<1x64x32xf32, #tpu.memory_space<vmem>>) attributes {dimension_semantics = [#tpu.dimension_semantics<parallel>], iteration_bounds = array<i64: 2>, scalar_prefetch = 0 : i64, scratch_operands = 0 : i64, tpu.core_type = #tpu.core_type<tc>, window_params = [{transform_indices = @transform_0, window_bounds = array<i64: 1, 64, 32>}, {transform_indices = @transform_1, window_bounds = array<i64: 2, 1, 64, 32>}, {transform_indices = @transform_2, window_bounds = array<i64: 2, 1, 64, 32>}, {pipeline_mode = #tpu.pipeline_mode<synchronous>, transform_indices = @transform_3, window_bounds = array<i64: 32, 64>}, {pipeline_mode = #tpu.pipeline_mode<synchronous>, transform_indices = @transform_4, window_bounds = array<i64: 1, 64>}, {pipeline_mode = #tpu.pipeline_mode<synchronous>, transform_indices = @transform_5, window_bounds = array<i64: 2, 32, 32>}, {pipeline_mode = #tpu.pipeline_mode<synchronous>, transform_indices = @transform_6, window_bounds = array<i64: 1, 32>}, {transform_indices = @transform_7, window_bounds = array<i64: 1, 64, 32>}]} {
    %c0 = arith.constant 0 : index
    %c0_0 = arith.constant 0 : index
    %c0_1 = arith.constant 0 : index
    %0 = vector.load %arg1[%c0, %c0_0, %c0_1] : memref<1x64x32xf32, #tpu.memory_space<vmem>>, vector<1x64x32xf32>
    %1 = vector.shape_cast %0 : vector<1x64x32xf32> to vector<64x32xf32>
    %c0_2 = arith.constant 0 : index
    %c0_3 = arith.constant 0 : index
    %2 = vector.load %arg4[%c0_2, %c0_3] : memref<32x64xf32, #tpu.memory_space<vmem>>, vector<32x64xf32>
    %cst = arith.constant dense<0.000000e+00> : vector<64x64xf32>
    %3 = tpu.matmul %1, %2, %cst {dimension_numbers = #tpu.dot_dimension_numbers<[1], [0], [0], [1], [0, 0, 1, 1], [], []>} : vector<64x32xf32>, vector<32x64xf32>, vector<64x64xf32> -> vector<64x64xf32>
    %c0_4 = arith.constant 0 : index
    %c0_5 = arith.constant 0 : index
    %4 = vector.load %arg5[%c0_4, %c0_5] : memref<1x64xf32, #tpu.memory_space<vmem>>, vector<1x64xf32>
    %5 = vector.broadcast %4 : vector<1x64xf32> to vector<64x64xf32>
    %6 = arith.addf %3, %5 : vector<64x64xf32>
    %cst_6 = arith.constant 0.000000e+00 : f32
    %7 = vector.broadcast %cst_6 : f32 to vector<64x32xf32>
    %8 = vector.extract_strided_slice %6 {offsets = [0, 0], sizes = [64, 32], strides = [1, 1]} : vector<64x64xf32> to vector<64x32xf32>
    %c0_7 = arith.constant 0 : index
    %c0_8 = arith.constant 0 : index
    %c0_9 = arith.constant 0 : index
    %c0_10 = arith.constant 0 : index
    %9 = vector.load %arg2[%c0_7, %c0_8, %c0_9, %c0_10] : memref<2x1x64x32xf32, #tpu.memory_space<vmem>>, vector<1x1x64x32xf32>
    %10 = vector.shape_cast %9 : vector<1x1x64x32xf32> to vector<64x32xf32>
    %cst_11 = arith.constant dense<0.000000e+00> : vector<64x64xf32>
    %11 = tpu.matmul %8, %10, %cst_11 {dimension_numbers = #tpu.dot_dimension_numbers<[1], [1], [0], [0], [0, 0, 1, 0], [], []>} : vector<64x32xf32>, vector<64x32xf32>, vector<64x64xf32> -> vector<64x64xf32>
    %cst_12 = arith.constant dense<0xFF800000> : vector<64xf32>
    %12 = vector.multi_reduction <maximumf>, %11, %cst_12 [1] : vector<64x64xf32> to vector<64xf32>
    %13 = vector.shape_cast %12 : vector<64xf32> to vector<64x1xf32>
    %14 = vector.broadcast %13 : vector<64x1xf32> to vector<64x64xf32>
    %15 = arith.subf %11, %14 : vector<64x64xf32>
    %16 = math.exp %15 : vector<64x64xf32>
    %cst_13 = arith.constant dense<0.000000e+00> : vector<64xf32>
    %17 = vector.multi_reduction <add>, %16, %cst_13 [1] : vector<64x64xf32> to vector<64xf32>
    %18 = vector.shape_cast %17 : vector<64xf32> to vector<64x1xf32>
    %c0_14 = arith.constant 0 : index
    %c0_15 = arith.constant 0 : index
    %c0_16 = arith.constant 0 : index
    %c0_17 = arith.constant 0 : index
    %19 = vector.load %arg3[%c0_14, %c0_15, %c0_16, %c0_17] : memref<2x1x64x32xf32, #tpu.memory_space<vmem>>, vector<1x1x64x32xf32>
    %20 = vector.shape_cast %19 : vector<1x1x64x32xf32> to vector<64x32xf32>
    %c0_18 = arith.constant 0 : index
    %c0_19 = arith.constant 0 : index
    %c0_20 = arith.constant 0 : index
    %21 = vector.load %arg6[%c0_18, %c0_19, %c0_20] : memref<2x32x32xf32, #tpu.memory_space<vmem>>, vector<1x32x32xf32>
    %22 = vector.shape_cast %21 : vector<1x32x32xf32> to vector<32x32xf32>
    %cst_21 = arith.constant dense<0.000000e+00> : vector<64x32xf32>
    %23 = tpu.matmul %20, %22, %cst_21 {dimension_numbers = #tpu.dot_dimension_numbers<[1], [0], [0], [1], [0, 0, 1, 1], [], []>} : vector<64x32xf32>, vector<32x32xf32>, vector<64x32xf32> -> vector<64x32xf32>
    %cst_22 = arith.constant dense<0.000000e+00> : vector<64x32xf32>
    %24 = tpu.matmul %16, %23, %cst_22 {dimension_numbers = #tpu.dot_dimension_numbers<[1], [0], [0], [1], [0, 0, 1, 1], [], []>} : vector<64x64xf32>, vector<64x32xf32>, vector<64x32xf32> -> vector<64x32xf32>
    %25 = tpu.reciprocal %18 {approx = true} : vector<64x1xf32> -> vector<64x1xf32>
    %26 = vector.broadcast %25 : vector<64x1xf32> to vector<64x32xf32>
    %27 = arith.mulf %24, %26 : vector<64x32xf32>
    %28 = arith.addf %7, %27 : vector<64x32xf32>
    %29 = vector.extract_strided_slice %6 {offsets = [0, 32], sizes = [64, 32], strides = [1, 1]} : vector<64x64xf32> to vector<64x32xf32>
    %c1 = arith.constant 1 : index
    %c0_23 = arith.constant 0 : index
    %c0_24 = arith.constant 0 : index
    %c0_25 = arith.constant 0 : index
    %30 = vector.load %arg2[%c1, %c0_23, %c0_24, %c0_25] : memref<2x1x64x32xf32, #tpu.memory_space<vmem>>, vector<1x1x64x32xf32>
    %31 = vector.shape_cast %30 : vector<1x1x64x32xf32> to vector<64x32xf32>
    %cst_26 = arith.constant dense<0.000000e+00> : vector<64x64xf32>
    %32 = tpu.matmul %29, %31, %cst_26 {dimension_numbers = #tpu.dot_dimension_numbers<[1], [1], [0], [0], [0, 0, 1, 0], [], []>} : vector<64x32xf32>, vector<64x32xf32>, vector<64x64xf32> -> vector<64x64xf32>
    %cst_27 = arith.constant dense<0xFF800000> : vector<64xf32>
    %33 = vector.multi_reduction <maximumf>, %32, %cst_27 [1] : vector<64x64xf32> to vector<64xf32>
    %34 = vector.shape_cast %33 : vector<64xf32> to vector<64x1xf32>
    %35 = vector.broadcast %34 : vector<64x1xf32> to vector<64x64xf32>
    %36 = arith.subf %32, %35 : vector<64x64xf32>
    %37 = math.exp %36 : vector<64x64xf32>
    %cst_28 = arith.constant dense<0.000000e+00> : vector<64xf32>
    %38 = vector.multi_reduction <add>, %37, %cst_28 [1] : vector<64x64xf32> to vector<64xf32>
    %39 = vector.shape_cast %38 : vector<64xf32> to vector<64x1xf32>
    %c1_29 = arith.constant 1 : index
    %c0_30 = arith.constant 0 : index
    %c0_31 = arith.constant 0 : index
    %c0_32 = arith.constant 0 : index
    %40 = vector.load %arg3[%c1_29, %c0_30, %c0_31, %c0_32] : memref<2x1x64x32xf32, #tpu.memory_space<vmem>>, vector<1x1x64x32xf32>
    %41 = vector.shape_cast %40 : vector<1x1x64x32xf32> to vector<64x32xf32>
    %c1_33 = arith.constant 1 : index
    %c0_34 = arith.constant 0 : index
    %c0_35 = arith.constant 0 : index
    %42 = vector.load %arg6[%c1_33, %c0_34, %c0_35] : memref<2x32x32xf32, #tpu.memory_space<vmem>>, vector<1x32x32xf32>
    %43 = vector.shape_cast %42 : vector<1x32x32xf32> to vector<32x32xf32>
    %cst_36 = arith.constant dense<0.000000e+00> : vector<64x32xf32>
    %44 = tpu.matmul %41, %43, %cst_36 {dimension_numbers = #tpu.dot_dimension_numbers<[1], [0], [0], [1], [0, 0, 1, 1], [], []>} : vector<64x32xf32>, vector<32x32xf32>, vector<64x32xf32> -> vector<64x32xf32>
    %cst_37 = arith.constant dense<0.000000e+00> : vector<64x32xf32>
    %45 = tpu.matmul %37, %44, %cst_37 {dimension_numbers = #tpu.dot_dimension_numbers<[1], [0], [0], [1], [0, 0, 1, 1], [], []>} : vector<64x64xf32>, vector<64x32xf32>, vector<64x32xf32> -> vector<64x32xf32>
    %46 = tpu.reciprocal %39 {approx = true} : vector<64x1xf32> -> vector<64x1xf32>
    %47 = vector.broadcast %46 : vector<64x1xf32> to vector<64x32xf32>
    %48 = arith.mulf %45, %47 : vector<64x32xf32>
    %49 = arith.addf %28, %48 : vector<64x32xf32>
    %c0_38 = arith.constant 0 : index
    %c0_39 = arith.constant 0 : index
    %50 = vector.load %arg7[%c0_38, %c0_39] : memref<1x32xf32, #tpu.memory_space<vmem>>, vector<1x32xf32>
    %51 = vector.broadcast %50 : vector<1x32xf32> to vector<64x32xf32>
    %52 = arith.addf %49, %51 : vector<64x32xf32>
    %c0_40 = arith.constant 0 : index
    %c0_41 = arith.constant 0 : index
    %c0_42 = arith.constant 0 : index
    %53 = vector.load %arg8[%c0_40, %c0_41, %c0_42] : memref<1x64x32xf32, #tpu.memory_space<vmem>>, vector<1x64x32xf32>
    %54 = vector.shape_cast %53 : vector<1x64x32xf32> to vector<64x32xf32>
    %55 = vector.shape_cast %52 : vector<64x32xf32> to vector<1x64x32xf32>
    tpu.vector_store %arg8[%c0_40, %c0_41, %c0_42], %55 {strides = array<i32>} : memref<1x64x32xf32, #tpu.memory_space<vmem>>, vector<1x64x32xf32>,
    return
  }
  func.func @transform_0(%arg0: i32) -> (i32, i32, i32) {
    %c0_i32 = arith.constant 0 : i32
    %c0_i32_0 = arith.constant 0 : i32
    %c0_i32_1 = arith.constant 0 : i32
    return %arg0, %c0_i32, %c0_i32_0 : i32, i32, i32
  }
  func.func @transform_1(%arg0: i32) -> (i32, i32, i32, i32) {
    %c0_i32 = arith.constant 0 : i32
    %c0_i32_0 = arith.constant 0 : i32
    %c0_i32_1 = arith.constant 0 : i32
    %c0_i32_2 = arith.constant 0 : i32
    return %c0_i32, %arg0, %c0_i32_0, %c0_i32_1 : i32, i32, i32, i32
  }
  func.func @transform_2(%arg0: i32) -> (i32, i32, i32, i32) {
    %c0_i32 = arith.constant 0 : i32
    %c0_i32_0 = arith.constant 0 : i32
    %c0_i32_1 = arith.constant 0 : i32
    %c0_i32_2 = arith.constant 0 : i32
    return %c0_i32, %arg0, %c0_i32_0, %c0_i32_1 : i32, i32, i32, i32
  }
  func.func @transform_3(%arg0: i32) -> (i32, i32) {
    %c0_i32 = arith.constant 0 : i32
    %c0_i32_0 = arith.constant 0 : i32
    %c0_i32_1 = arith.constant 0 : i32
    return %c0_i32, %c0_i32_0 : i32, i32
  }
  func.func @transform_4(%arg0: i32) -> (i32, i32) {
    %c0_i32 = arith.constant 0 : i32
    %c0_i32_0 = arith.constant 0 : i32
    %c0_i32_1 = arith.constant 0 : i32
    return %c0_i32, %c0_i32_0 : i32, i32
  }
  func.func @transform_5(%arg0: i32) -> (i32, i32, i32) {
    %c0_i32 = arith.constant 0 : i32
    %c0_i32_0 = arith.constant 0 : i32
    %c0_i32_1 = arith.constant 0 : i32
    %c0_i32_2 = arith.constant 0 : i32
    return %c0_i32, %c0_i32_0, %c0_i32_1 : i32, i32, i32
  }
  func.func @transform_6(%arg0: i32) -> (i32, i32) {
    %c0_i32 = arith.constant 0 : i32
    %c0_i32_0 = arith.constant 0 : i32
    %c0_i32_1 = arith.constant 0 : i32
    return %c0_i32, %c0_i32_0 : i32, i32
  }
  func.func @transform_7(%arg0: i32) -> (i32, i32, i32) {
    %c0_i32 = arith.constant 0 : i32
    %c0_i32_0 = arith.constant 0 : i32
    %c0_i32_1 = arith.constant 0 : i32
    return %arg0, %c0_i32, %c0_i32_0 : i32, i32, i32
  }
}

</mosaic_0001>

<bundles_post_ra>
// kernel: tpu_custom_call.1
= control target key start
LH: loop header
LB: loop body
LE: loop exit
PB: predicated region body
PF: predicated region fallthrough
CT: control target
= control target key end

     0   :  { %s2493_s24 = smov 0   ;;  %s2495_s25 = smov 0   ;;  %s2936_s0 = inlined_call_operand.vmem [shape: f32[2,64,32], index: 0, kind: input, shape index: {}]   ;;  %s2937_s1 = inlined_call_operand.vmem [shape: f32[2,2,64,32], index: 1, kind: input, shape index: {}]   ;;  %s2938_s2 = inlined_call_operand.vmem [shape: f32[2,2,64,32], index: 2, kind: input, shape index: {}]   ;;  %s2939_s3 = inlined_call_operand.vmem [shape: f32[32,64], index: 3, kind: input, shape index: {}]   ;;  %s2940_s4 = inlined_call_operand.vmem [shape: f32[1,64], index: 4, kind: input, shape index: {}]   ;;  %s2941_s5 = inlined_call_operand.vmem [shape: f32[2,32,32], index: 5, kind: input, shape index: {}]   ;;  %s2942_s6 = inlined_call_operand.vmem [shape: f32[1,32], index: 6, kind: input, shape index: {}]   ;;  %s2943_s7 = inlined_call_operand.vmem [shape: f32[2,64,32], index: 7, kind: output, shape index: {}]  }
   0x1   :  { %s2497_s26 = smov 0  }
   0x2 LB: > { %s1838_s27 = sadd.s32 4294967295, %s2450_s26   ;;  %s2510_s28 = sadd.s32 1, %s2450_s26   ;;  %s2450_s26 = sphi %s2497_s26, %s2949_s26   ;;  %s2446_s25 = sphi %s2495_s25, %s2948_s25   ;;  %s2442_s24 = sphi %s2493_s24, %s2947_s24  }
   0x3   : > { %s47_s29 = ssub.s32 %s2450_s26, %s2510_s28  ;;  %s50_s30 = sadd.s32 1, %s2446_s25 }
   0x4   : > { %p48_p0 = scmp.eq.s32.totalorder %s47_s29, 0  ;;  %p57_p1 = scmp.ne.s32.totalorder %s2446_s25, %s2442_s24 }
   0x5   : > { %p58_p2 = scmp.eq.s32.totalorder %s2450_s26, 0  ;;  %p1841_p4 = scmp.ge.s32.totalorder %s2450_s26, 2 }
   0x6   : > { %s2519_s8 = scalar_select %p48_p0, %s2446_s25, %s50_s30  }
   0x7   : > { %p2521_p3 = por %p58_p2, %p57_p1  ;;  %231 = sbr.rel (%p1841_p4) target bundleno = 38 (0x26), region = 32 }
   0xe   : > { %242 = sbr.rel (!%p2521_p3) target bundleno = 26 (0x1a), region = 40  ;;  %s244_s10 = sand.u32 (%p2521_p3), 1, %s2446_s25  }
   0xf   : > { %s1951_s11 = sshll.u32 (%p2521_p3), %s2450_s26, 6  ;;  %s1842_s12 = sshll.u32 (%p2521_p3), %s244_s10, 7 }
  0x10   : > { %s2533_s15 = scalar_lea.vmem (%p2521_p3), %s2937_s1, %s1951_s11  ;;  %s246_s16 = scalar_lea.vmem (%p2521_p3), [#allocation2], %s1842_s12 }
  0x11   : > { %v307_v0 = vld [vmem:[%s2533_s15] sm:$0xff] (%p2521_p3)  ;;  %v309_v1 = vld [vmem:[%s2533_s15 + $0x8] sm:$0xff] (%p2521_p3)  ;;  %v311_v2 = vld [vmem:[%s2533_s15 + $0x10] sm:$0xff] (%p2521_p3) }
  0x12   : > { %308 = vst [vmem:[%s246_s16] sm:$0xff] (%p2521_p3), %v307_v0  ;;  %310 = vst [vmem:[%s246_s16 + $0x8] sm:$0xff] (%p2521_p3), %v309_v1  ;;  %v313_v3 = vld [vmem:[%s2533_s15 + $0x18] sm:$0xff] (%p2521_p3)  ;;  %v315_v4 = vld [vmem:[%s2533_s15 + $0x20] sm:$0xff] (%p2521_p3) }
  0x13   : > { %312 = vst [vmem:[%s246_s16 + $0x10] sm:$0xff] (%p2521_p3), %v311_v2  ;;  %v317_v5 = vld [vmem:[%s2533_s15 + $0x28] sm:$0xff] (%p2521_p3)  ;;  %314 = vst [vmem:[%s246_s16 + $0x18] sm:$0xff] (%p2521_p3), %v313_v3  ;;  %v319_v6 = vld [vmem:[%s2533_s15 + $0x30] sm:$0xff] (%p2521_p3) }
  0x14   : > { %316 = vst [vmem:[%s246_s16 + $0x20] sm:$0xff] (%p2521_p3), %v315_v4  ;;  %318 = vst [vmem:[%s246_s16 + $0x28] sm:$0xff] (%p2521_p3), %v317_v5  ;;  %v321_v7 = vld [vmem:[%s2533_s15 + $0x38] sm:$0xff] (%p2521_p3)  ;;  %v323_v8 = vld [vmem:[%s2533_s15 + $0x80] sm:$0xff] (%p2521_p3) }
  0x15   : > { %320 = vst [vmem:[%s246_s16 + $0x30] sm:$0xff] %v319_v6  ;;  %322 = vst [vmem:[%s246_s16 + $0x38] sm:$0xff] %v321_v7  ;;  %v325_v9 = vld [vmem:[%s2533_s15 + $0x88] sm:$0xff]  ;;  %v327_v10 = vld [vmem:[%s2533_s15 + $0x90] sm:$0xff] }
  0x16   : > { %324 = vst [vmem:[%s246_s16 + $0x40] sm:$0xff] %v323_v8  ;;  %v329_v11 = vld [vmem:[%s2533_s15 + $0x98] sm:$0xff]  ;;  %326 = vst [vmem:[%s246_s16 + $0x48] sm:$0xff] %v325_v9  ;;  %v331_v12 = vld [vmem:[%s2533_s15 + $0xa0] sm:$0xff] }
  0x17   : > { %328 = vst [vmem:[%s246_s16 + $0x50] sm:$0xff] %v327_v10  ;;  %330 = vst [vmem:[%s246_s16 + $0x58] sm:$0xff] %v329_v11  ;;  %v333_v13 = vld [vmem:[%s2533_s15 + $0xa8] sm:$0xff]  ;;  %v335_v14 = vld [vmem:[%s2533_s15 + $0xb0] sm:$0xff] }
  0x18   : > { %332 = vst [vmem:[%s246_s16 + $0x60] sm:$0xff] %v331_v12  ;;  %334 = vst [vmem:[%s246_s16 + $0x68] sm:$0xff] %v333_v13  ;;  %v337_v15 = vld [vmem:[%s2533_s15 + $0xb8] sm:$0xff] }
  0x19   : > { %336 = vst [vmem:[%s246_s16 + $0x70] sm:$0xff] %v335_v14  ;;  %338 = vst [vmem:[%s246_s16 + $0x78] sm:$0xff] %v337_v15 }
  0x1a PF: > { %344 = sbr.rel (!%p2521_p3) target bundleno = 38 (0x26), region = 78  ;;  %s346_s17 = sand.u32 (%p2521_p3), 1, %s2446_s25  }
  0x1b   : > { %s1952_s18 = sshll.u32 (%p2521_p3), %s2450_s26, 6  ;;  %s1845_s19 = sshll.u32 (%p2521_p3), %s346_s17, 7 }
  0x1c   : > { %s2558_s22 = scalar_lea.vmem (%p2521_p3), %s2938_s2, %s1952_s18  ;;  %s348_s23 = scalar_lea.vmem (%p2521_p3), [#allocation3], %s1845_s19 }
  0x1d   : > { %v409_v16 = vld [vmem:[%s2558_s22] sm:$0xff] (%p2521_p3)  ;;  %v411_v17 = vld [vmem:[%s2558_s22 + $0x8] sm:$0xff] (%p2521_p3)  ;;  %v413_v18 = vld [vmem:[%s2558_s22 + $0x10] sm:$0xff] (%p2521_p3) }
  0x1e   : > { %410 = vst [vmem:[%s348_s23] sm:$0xff] (%p2521_p3), %v409_v16  ;;  %412 = vst [vmem:[%s348_s23 + $0x8] sm:$0xff] (%p2521_p3), %v411_v17  ;;  %v415_v19 = vld [vmem:[%s2558_s22 + $0x18] sm:$0xff] (%p2521_p3)  ;;  %v417_v20 = vld [vmem:[%s2558_s22 + $0x20] sm:$0xff] (%p2521_p3) }
  0x1f   : > { %414 = vst [vmem:[%s348_s23 + $0x10] sm:$0xff] (%p2521_p3), %v413_v18  ;;  %v419_v21 = vld [vmem:[%s2558_s22 + $0x28] sm:$0xff] (%p2521_p3)  ;;  %416 = vst [vmem:[%s348_s23 + $0x18] sm:$0xff] (%p2521_p3), %v415_v19  ;;  %v421_v22 = vld [vmem:[%s2558_s22 + $0x30] sm:$0xff] (%p2521_p3) }
  0x20   : > { %418 = vst [vmem:[%s348_s23 + $0x20] sm:$0xff] (%p2521_p3), %v417_v20  ;;  %420 = vst [vmem:[%s348_s23 + $0x28] sm:$0xff] (%p2521_p3), %v419_v21  ;;  %v423_v23 = vld [vmem:[%s2558_s22 + $0x38] sm:$0xff] (%p2521_p3)  ;;  %v425_v24 = vld [vmem:[%s2558_s22 + $0x80] sm:$0xff] (%p2521_p3) }
  0x21   : > { %422 = vst [vmem:[%s348_s23 + $0x30] sm:$0xff] %v421_v22  ;;  %424 = vst [vmem:[%s348_s23 + $0x38] sm:$0xff] %v423_v23  ;;  %v427_v25 = vld [vmem:[%s2558_s22 + $0x88] sm:$0xff]  ;;  %v429_v26 = vld [vmem:[%s2558_s22 + $0x90] sm:$0xff] }
  0x22   : > { %426 = vst [vmem:[%s348_s23 + $0x40] sm:$0xff] %v425_v24  ;;  %v431_v27 = vld [vmem:[%s2558_s22 + $0x98] sm:$0xff]  ;;  %428 = vst [vmem:[%s348_s23 + $0x48] sm:$0xff] %v427_v25  ;;  %v433_v28 = vld [vmem:[%s2558_s22 + $0xa0] sm:$0xff] }
  0x23   : > { %430 = vst [vmem:[%s348_s23 + $0x50] sm:$0xff] %v429_v26  ;;  %432 = vst [vmem:[%s348_s23 + $0x58] sm:$0xff] %v431_v27  ;;  %v435_v29 = vld [vmem:[%s2558_s22 + $0xa8] sm:$0xff]  ;;  %v437_v30 = vld [vmem:[%s2558_s22 + $0xb0] sm:$0xff] }
  0x24   : > { %434 = vst [vmem:[%s348_s23 + $0x60] sm:$0xff] %v433_v28  ;;  %436 = vst [vmem:[%s348_s23 + $0x68] sm:$0xff] %v435_v29  ;;  %v439_v31 = vld [vmem:[%s2558_s22 + $0xb8] sm:$0xff] }
  0x25   : > { %438 = vst [vmem:[%s348_s23 + $0x70] sm:$0xff] %v437_v30  ;;  %440 = vst [vmem:[%s348_s23 + $0x78] sm:$0xff] %v439_v31 }
  0x26 PF: > { %p1848_p5 = scmp.ge.s32.totalorder %s2450_s26, 1  ;;  %p445_p6 = scmp.lt.s32.totalorder %s2450_s26, 3 }
  0x28   : > { %p446_p7 = pnand %p1848_p5, %p445_p6 }
  0x29   : > { %v517_v32 = vld [vmem:[%s2939_s3] sm:$0xff] (!%p446_p7)  ;;  %v518_v33 = vld [vmem:[%s2939_s3 + $0x8] sm:$0xff] (!%p446_p7)  ;;  %v519_v34 = vld [vmem:[%s2939_s3 + $0x10] sm:$0xff] (!%p446_p7)  ;;  %p499_p8 = scmp.lt.s32.totalorder (!%p446_p7), %s1838_s27, 1  ;;  %s452_s13 = sand.u32 (!%p446_p7), 1, %s2442_s24   ;;  %vm528_vm0 = vcmask (!%p446_p7), 261120  }
  0x2a   : > { %449 = sbr.rel (%p446_p7) target bundleno = 1120 (0x460), region = 116  ;;  %v2227_v35 = vpack.c.bf16 (!%p446_p7), %v518_v33, %v517_v32  ;;  %v520_v36 = vld [vmem:[%s2939_s3 + $0x18] sm:$0xff] (!%p446_p7)  ;;  %s2593_s16 = sshll.u32 (!%p446_p7), %s452_s13, 7  ;;  %vm2601_vm1 = vmpackc.low (!%p446_p7), %vm528_vm0, %vm528_vm0  ;;  %v1855_v62 = vld [vmem:[%s2940_s4] ss:$0 sm:$0xff] (!%p446_p7)  ;;  %vm819_vm2 = vcmask (!%p446_p7), 523264  }
  0x2b   : > { %v2231_v37 = vpack.c.bf16 (!%p446_p7), %v520_v36, %v519_v34  ;;  %s2607_s17 = scalar_lea.vmem (!%p446_p7), [#allocation2], %s2593_s16  ;;  %s2452_s22 = smov (!%p446_p7), 96   ;;  %v900_v6 = vld [vmem:[%s2941_s5] sm:$0xff] (!%p446_p7)  ;;  %v901_v7 = vld [vmem:[%s2941_s5 + $0x8] sm:$0xff] (!%p446_p7)  ;;  %v902_v13 = vld [vmem:[%s2941_s5 + $0x10] sm:$0xff] (!%p446_p7) }
  0x2c   : > { %2228 = vmatprep.subr.bf16.mxu0 (!%p446_p7), %v2227_v35  ;;  %v658_v39 = vld [vmem:[%s2607_s17] sm:$0xff] (!%p446_p7)  ;;  %v659_v40 = vld [vmem:[%s2607_s17 + $0x8] sm:$0xff] (!%p446_p7)  ;;  %v660_v41 = vld [vmem:[%s2607_s17 + $0x10] sm:$0xff] (!%p446_p7)  ;;  %v2259_v9 = vpack.c.bf16 (!%p446_p7), %v901_v7, %v900_v6  ;;  %s2680_s14 = scalar_lea.vmem (!%p446_p7), [#allocation3], %s2593_s16 }
  0x2d   : > { %2230 = vmatpush3.bf16.msra.mxu0 (!%p446_p7), %v2227_v35  ;;  %v2235_v42 = vpack.c.bf16 (!%p446_p7), %v659_v40, %v658_v39  ;;  %v661_v43 = vld [vmem:[%s2607_s17 + $0x18] sm:$0xff] (!%p446_p7)  ;;  %v662_v48 = vld [vmem:[%s2607_s17 + $0x20] sm:$0xff] (!%p446_p7)  ;;  %v663_v49 = vld [vmem:[%s2607_s17 + $0x28] sm:$0xff] (!%p446_p7) }
  0x2e   : > { %2232 = vmatprep.subr.bf16.mxu0 (!%p446_p7), %v2231_v37  ;;  %v2241_v45 = vpack.c.bf16 (!%p446_p7), %v661_v43, %v660_v41  ;;  %v2247_v52 = vpack.c.bf16 (!%p446_p7), %v663_v49, %v662_v48  ;;  %v664_v55 = vld [vmem:[%s2607_s17 + $0x30] sm:$0xff] (!%p446_p7)  ;;  %v665_v56 = vld [vmem:[%s2607_s17 + $0x38] sm:$0xff] (!%p446_p7)  ;;  %v1896_v59 = vld [vmem:[%s2607_s17 + $0x40] sm:$0xff] (!%p446_p7) }
  0x2f   : > { %2237 = vmatprep.subr.msk.bf16.mxu1 (!%p446_p7), %vm2601_vm1, %v2235_v42  ;;  %v2253_v58 = vpack.c.bf16 (!%p446_p7), %v665_v56, %v664_v55  ;;  %v1897_v60 = vld [vmem:[%s2607_s17 + $0x48] sm:$0xff] (!%p446_p7)  ;;  %v1898_v0 = vld [vmem:[%s2607_s17 + $0x50] sm:$0xff] (!%p446_p7)  ;;  %v1899_v1 = vld [vmem:[%s2607_s17 + $0x58] sm:$0xff] (!%p446_p7) }
  0x30   : > { %2240 = vmatpush3.bf16.xpose.msk.msra.mxu1 (!%p446_p7), %vm2601_vm1, %v2235_v42  ;;  %v2283_v61 = vpack.c.bf16 (!%p446_p7), %v1897_v60, %v1896_v59  ;;  %v2289_v5 = vpack.c.bf16 (!%p446_p7), %v1899_v1, %v1898_v0  ;;  %v903_v14 = vld [vmem:[%s2941_s5 + $0x18] sm:$0xff] (!%p446_p7)  ;;  %v1900_v16 = vld [vmem:[%s2607_s17 + $0x60] sm:$0xff] (!%p446_p7)  ;;  %v1901_v17 = vld [vmem:[%s2607_s17 + $0x68] sm:$0xff] (!%p446_p7) }
  0x31   : > { %s2951_s27 = smov (!%p499_p8, %s1838_s27), 1  ;;  %2234 = vmatpush3.bf16.msra.mxu0 %v2231_v37  ;;  %2243 = vmatprep.subr.msk.bf16.mxu1 %vm2601_vm1, %v2241_v45  ;;  %v2263_v18 = vpack.c.bf16 %v903_v14, %v902_v13  ;;  %v892_v19 = vld [vmem:[%s2680_s14] sm:$0xff]  ;;  %v2295_v23 = vpack.c.bf16 %v1901_v17, %v1900_v16  ;;  %v893_v28 = vld [vmem:[%s2680_s14 + $0x8] sm:$0xff]  ;;  %v1902_v29 = vld [vmem:[%s2607_s17 + $0x70] sm:$0xff] }
  0x32   : > { %s1953_s24 = sshll.u32 %s2951_s27, 6  ;;  %2260 = vmatprep.subr.bf16.mxu0 %v2259_v9  ;;  %v1903_v30 = vld [vmem:[%s2607_s17 + $0x78] sm:$0xff]  ;;  %v894_v31 = vld [vmem:[%s2680_s14 + $0x10] sm:$0xff]  ;;  %v896_v34 = vld [vmem:[%s2680_s14 + $0x20] sm:$0xff] }
  0x33   : > { %s503_s19 = scalar_lea.vmem %s2936_s0, %s1953_s24  ;;  %v2301_v32 = vpack.c.bf16 %v1903_v30, %v1902_v29  ;;  %v895_v33 = vld [vmem:[%s2680_s14 + $0x18] sm:$0xff]  ;;  %v897_v35 = vld [vmem:[%s2680_s14 + $0x28] sm:$0xff]  ;;  %v898_v36 = vld [vmem:[%s2680_s14 + $0x30] sm:$0xff]  ;;  %s2904_s9 = scalar_lea.vmem %s2943_s7, %s1953_s24 }
  0x34   : > { %v509_v44 = vld [vmem:[%s503_s19] sm:$0xff]  ;;  %v510_v46 = vld [vmem:[%s503_s19 + $0x8] sm:$0xff]  ;;  %v511_v47 = vld [vmem:[%s503_s19 + $0x10] sm:$0xff] }
  0x35   : > { %2063 = vmatprep.mubr.msk.f32.mxu0 %vm528_vm0, %v509_v44  ;;  %v512_v50 = vld [vmem:[%s503_s19 + $0x18] sm:$0xff]  ;;  %v513_v51 = vld [vmem:[%s503_s19 + $0x20] sm:$0xff]  ;;  %v514_v53 = vld [vmem:[%s503_s19 + $0x28] sm:$0xff] }
  0x36   : > { %2064 = vmatmul.mubr.msk.f32.vlgmr.msra.gmra.mrb[0].mxu0 %vm528_vm0, %v510_v46  ;;  %v515_v54 = vld [vmem:[%s503_s19 + $0x30] sm:$0xff]  ;;  %v516_v57 = vld [vmem:[%s503_s19 + $0x38] sm:$0xff] }
  0x37   : > { %2066 = vmatprep.mubr.msk.f32.mxu0 %vm528_vm0, %v511_v47  ;;  %2262 = vmatpush3.bf16.msra.mxu0 %v2259_v9  ;;  %v899_v37 = vld [vmem:[%s2680_s14 + $0x38] sm:$0xff] }
  0x38   : > { %2246 = vmatpush3.bf16.xpose.msk.msra.mxu1 %vm2601_vm1, %v2241_v45  ;;  %2264 = vmatprep.subr.bf16.mxu0 %v2263_v18 }
  0x39   : > { %2249 = vmatprep.subr.msk.bf16.mxu1 %vm2601_vm1, %v2247_v52 }
  0x3a   : > { %2067 = vmatmul.mubr.msk.f32.gmra.mrb[2].mxu0 %vm528_vm0, %v512_v50 }
  0x3b   : > { %2069 = vmatprep.mubr.msk.f32.mxu0 %vm528_vm0, %v513_v51  ;;  %2266 = vmatpush3.bf16.msra.mxu0 %v2263_v18 }
  0x3e   : > { %2070 = vmatmul.mubr.msk.f32.gmra.mrb[4].mxu0 %vm528_vm0, %v514_v53 }
  0x3f   : > { %2072 = vmatprep.mubr.msk.f32.mxu0 %vm528_vm0, %v515_v54 }
  0x40   : > { %2252 = vmatpush3.bf16.xpose.msk.msra.mxu1 %vm2601_vm1, %v2247_v52 }
  0x41   : > { %2255 = vmatprep.subr.msk.bf16.mxu1 %vm2601_vm1, %v2253_v58 }
  0x42   : > { %2073 = vmatmul.mubr.msk.f32.gmra.mrb[6].mxu0 %vm528_vm0, %v516_v57 }
  0x43   : > { %2111 = vmatprep.mubr.msk.f32.mxu0 %vm528_vm0, %v892_v19 }
  0x46   : > { %2112 = vmatmul.mubr.msk.f32.vlgmr.msra.gmra.mrb[8].mxu0 %vm528_vm0, %v893_v28 }
  0x47   : > { %2114 = vmatprep.mubr.msk.f32.mxu0 %vm528_vm0, %v894_v31 }
  0x48   : > { %2258 = vmatpush3.bf16.xpose.msk.msra.mxu1 %vm2601_vm1, %v2253_v58 }
  0x49   : > { %2285 = vmatprep.subr.msk.bf16.mxu1 %vm2601_vm1, %v2283_v61 }
  0x4a   : > { %2115 = vmatmul.mubr.msk.f32.gmra.mrb[10].mxu0 %vm528_vm0, %v895_v33 }
  0x4b   : > { %2117 = vmatprep.mubr.msk.f32.mxu0 %vm528_vm0, %v896_v34 }
  0x4e   : > { %2118 = vmatmul.mubr.msk.f32.gmra.mrb[12].mxu0 %vm528_vm0, %v897_v35 }
  0x4f   : > { %2120 = vmatprep.mubr.msk.f32.mxu0 %vm528_vm0, %v898_v36 }
  0x52   : > { %2121 = vmatmul.mubr.msk.f32.gmra.mrb[14].mxu0 %vm528_vm0, %v899_v37 }
 0x109   : > { %v2065_v63 = vpop.f32.mrb[0].mxu0 }
 0x10a   : > { %v625_v2 = vadd.f32 %v2065_v63, %v1855_v62  ;;  %v619_v3 = vpop.f32.mrb[1].mxu0 }
 0x10b   : > { %v620_v4 = vadd.f32 %v1855_v62, %v619_v3 }
 0x10c   : > { %1197 = vrot.lane.b32.xlu0 %v625_v2, %s2452_s22 }
 0x10d   : > { %v2068_v8 = vpop.f32.mrb[2].mxu0  ;;  %2091 = vmatprep.mubr.msk.f32.mxu1 %vm528_vm0, %v620_v4 }
 0x10e   : > { %v629_v10 = vpop.f32.mrb[3].mxu0  ;;  %2092 = vmatmul.mubr.msk.f32.vlgmr.msra.gmra.mrb[0].mxu1 %vm528_vm0, %v625_v2  ;;  %v635_v12 = vadd.f32 %v2068_v8, %v1855_v62 }
 0x10f   : > { %v630_v11 = vadd.f32 %v1855_v62, %v629_v10  ;;  %2288 = vmatpush3.bf16.xpose.msk.msra.mxu1 %vm2601_vm1, %v2283_v61  ;;  %v1928_v10 = vld [vmem:[%s2941_s5 + $0x20] sm:$0xff] }
 0x110   : > { %1195 = vrot.lane.b32.xlu0 %v620_v4, %s2452_s22  ;;  %2291 = vmatprep.subr.msk.bf16.mxu1 %vm2601_vm1, %v2289_v5 }
 0x111   : > { %v2071_v15 = vpop.f32.mrb[4].mxu0  ;;  %1199 = vrot.lane.b32.xlu1 %v630_v11, %s2452_s22  ;;  %2094 = vmatprep.mubr.msk.f32.mxu1 %vm528_vm0, %v630_v11  ;;  %v1929_v11 = vld [vmem:[%s2941_s5 + $0x28] sm:$0xff] }
 0x112   : > { %v645_v20 = vadd.f32 %v2071_v15, %v1855_v62  ;;  %v639_v21 = vpop.f32.mrb[5].mxu0  ;;  %2095 = vmatmul.mubr.msk.f32.gmra.mrb[2].mxu1 %vm528_vm0, %v635_v12 }
 0x113   : > { %v640_v22 = vadd.f32 %v1855_v62, %v639_v21 }
 0x115   : > { %v2074_v24 = vpop.f32.mrb[6].mxu0  ;;  %1201 = vrot.lane.b32.xlu1 %v635_v12, %s2452_s22  ;;  %2097 = vmatprep.mubr.msk.f32.mxu1 %vm528_vm0, %v640_v22  ;;  %v2766_v12 = vpack.c.bf16 %v1929_v11, %v1928_v10  ;;  %v1922_v10 = vld [vmem:[%s2680_s14 + $0x50] sm:$0xff]  ;;  %v1923_v11 = vld [vmem:[%s2680_s14 + $0x58] sm:$0xff] }
 0x116   : > { %v655_v25 = vadd.f32 %v2074_v24, %v1855_v62  ;;  %v649_v26 = vpop.f32.mrb[7].mxu0  ;;  %2098 = vmatmul.mubr.msk.f32.gmra.mrb[4].mxu1 %vm528_vm0, %v645_v20  ;;  %1203 = vrot.lane.b32.xlu0 %v640_v22, %s2452_s22 }
 0x117   : > { %v650_v27 = vadd.f32 %v1855_v62, %v649_v26  ;;  %2294 = vmatpush3.bf16.xpose.msk.msra.mxu1 %vm2601_vm1, %v2289_v5 }
 0x118   : > { %2297 = vmatprep.subr.msk.bf16.mxu1 %vm2601_vm1, %v2295_v23 }
 0x119   : > { %1205 = vrot.lane.b32.xlu1 %v645_v20, %s2452_s22  ;;  %2100 = vmatprep.mubr.msk.f32.mxu1 %vm528_vm0, %v650_v27  ;;  %v2113_v59 = vpop.f32.mrb[8].mxu0 }
 0x11a   : > { %2101 = vmatmul.mubr.msk.f32.gmra.mrb[6].mxu1 %vm528_vm0, %v655_v25  ;;  %1207 = vrot.lane.b32.xlu0 %v650_v27, %s2452_s22  ;;  %v994_v62 = vpop.f32.mrb[9].mxu0 }
 0x11b   : > { %v2267_v63 = vpack.c.bf16 %v2113_v59, %v994_v62 }
 0x11d   : > { %1209 = vrot.lane.b32.xlu1 %v655_v25, %s2452_s22  ;;  %v2116_v0 = vpop.f32.mrb[10].mxu0  ;;  %2268 = vmatprep.subr.bf16.mxu0 %v2267_v63 }
 0x11e   : > { %v1004_v2 = vpop.f32.mrb[11].mxu0  ;;  %2270 = vmatpush3.bf16.msra.mxu0 %v2267_v63 }
 0x11f   : > { %2300 = vmatpush3.bf16.xpose.msk.msra.mxu1 %vm2601_vm1, %v2295_v23  ;;  %v2271_v3 = vpack.c.bf16 %v2116_v0, %v1004_v2 }
 0x120   : > { %2303 = vmatprep.subr.msk.bf16.mxu1 %vm2601_vm1, %v2301_v32 }
 0x121   : > { %v2119_v4 = vpop.f32.mrb[12].mxu0  ;;  %2272 = vmatprep.subr.bf16.mxu0 %v2271_v3 }
 0x122   : > { %v1014_v5 = vpop.f32.mrb[13].mxu0  ;;  %2274 = vmatpush3.bf16.msra.mxu0 %v2271_v3 }
 0x123   : > { %v2275_v6 = vpack.c.bf16 %v2119_v4, %v1014_v5 }
 0x125   : > { %2276 = vmatprep.subr.bf16.mxu0 %v2275_v6  ;;  %v2122_v7 = vpop.f32.mrb[14].mxu0 }
 0x126   : > { %2278 = vmatpush3.bf16.msra.mxu0 %v2275_v6  ;;  %v1024_v8 = vpop.f32.mrb[15].mxu0  ;;  %v1920_v6 = vld [vmem:[%s2680_s14 + $0x40] sm:$0xff] }
 0x127   : > { %2306 = vmatpush3.bf16.xpose.msk.msra.mxu1 %vm2601_vm1, %v2301_v32  ;;  %v2279_v9 = vpack.c.bf16 %v2122_v7, %v1024_v8 }
 0x129   : > { %2280 = vmatprep.subr.bf16.mxu0 %v2279_v9 }
 0x12a   : > { %2282 = vmatpush3.bf16.msra.mxu0 %v2279_v9  ;;  %v1921_v9 = vld [vmem:[%s2680_s14 + $0x48] sm:$0xff] }
 0x12b   : > { %2308 = vmatprep.subr.bf16.mxu0 %v2766_v12 }
 0x17e   : > { %v1198_v39 = vpop.permute.xlu0 %1197 }
 0x182   : > { %v1196_v40 = vpop.permute.xlu0 %1195 }
 0x183   : > { %v1200_v41 = vpop.permute.xlu1 %1199  ;;  %2167 = vmatprep.mubr.msk.f32.mxu1 %vm528_vm0, %v1196_v40 }
 0x184   : > { %2168 = vmatmul.mubr.msk.f32.vlgmr.msra.gmra.mrb[8].mxu1 %vm528_vm0, %v1198_v39 }
 0x185   : > { %2170 = vmatprep.mubr.msk.f32.mxu1 %vm528_vm0, %v1200_v41 }
 0x187   : > { %v1202_v42 = vpop.permute.xlu1 %1201 }
 0x188   : > { %2171 = vmatmul.mubr.msk.f32.gmra.mrb[10].mxu1 %vm528_vm0, %v1202_v42  ;;  %v1204_v43 = vpop.permute.xlu0 %1203 }
 0x189   : > { %2173 = vmatprep.mubr.msk.f32.mxu1 %vm528_vm0, %v1204_v43 }
 0x18b   : > { %v1206_v44 = vpop.permute.xlu1 %1205 }
 0x18c   : > { %2174 = vmatmul.mubr.msk.f32.gmra.mrb[12].mxu1 %vm528_vm0, %v1206_v44  ;;  %v1208_v38 = vpop.permute.xlu0 %1207 }
 0x18d   : > { %2176 = vmatprep.mubr.msk.f32.mxu1 %vm528_vm0, %v1208_v38 }
 0x18f   : > { %v1210_v45 = vpop.permute.xlu1 %1209 }
 0x190   : > { %2177 = vmatmul.mubr.msk.f32.gmra.mrb[14].mxu1 %vm528_vm0, %v1210_v45 }
 0x1e1   : > { %v2728_v46 = vpop.f32.mrb[0].mxu1 }
 0x1e2   : > { %v2730_v47 = vpop.f32.mrb[1].mxu1  ;;  %v823_v48 = vsel %vm819_vm2, %v2728_v46, -inf }
 0x1e3   : > { %824 = vmax.xlane.f32.xlu1 %v823_v48  ;;  %v820_v49 = vsel %vm819_vm2, %v2730_v47, -inf }
 0x1e4   : > { %821 = vmax.xlane.f32.xlu0 %v820_v49 }
 0x1e5   : > { %v2736_v50 = vpop.f32.mrb[2].mxu1 }
 0x1e6   : > { %v2738_v51 = vpop.f32.mrb[3].mxu1  ;;  %v829_v55 = vsel %vm819_vm2, %v2736_v50, -inf }
 0x1e7   : > { %v826_v52 = vsel %vm819_vm2, %v2738_v51, -inf }
 0x1e8   : > { %827 = vmax.xlane.f32.xlu0 %v826_v52 }
 0x1e9   : > { %v2742_v53 = vpop.f32.mrb[4].mxu1 }
 0x1ea   : > { %v2744_v54 = vpop.f32.mrb[5].mxu1  ;;  %v835_v60 = vsel %vm819_vm2, %v2742_v53, -inf }
 0x1eb   : > { %v832_v56 = vsel %vm819_vm2, %v2744_v54, -inf }
 0x1ec   : > { %830 = vmax.xlane.f32.xlu0 %v829_v55  ;;  %833 = vmax.xlane.f32.xlu1 %v832_v56 }
 0x1ed   : > { %v2750_v57 = vpop.f32.mrb[6].mxu1 }
 0x1ee   : > { %v2752_v58 = vpop.f32.mrb[7].mxu1  ;;  %v841_v1 = vsel %vm819_vm2, %v2750_v57, -inf }
 0x1ef   : > { %v838_v61 = vsel %vm819_vm2, %v2752_v58, -inf }
 0x1f0   : > { %836 = vmax.xlane.f32.xlu0 %v835_v60  ;;  %839 = vmax.xlane.f32.xlu1 %v838_v61 }
 0x1f4   : > { %842 = vmax.xlane.f32.xlu0 %v841_v1 }
 0x257   : > { %v2769_v13 = vpop.f32.mrb[8].mxu1 }
 0x258   : > { %v2771_v14 = vpop.f32.mrb[9].mxu1  ;;  %v1359_v15 = vsel %vm819_vm2, %v2769_v13, -inf }
 0x259   : > { %1360 = vmax.xlane.f32.xlu0 %v1359_v15  ;;  %v1356_v16 = vsel %vm819_vm2, %v2771_v14, -inf  ;;  %v1925_v15 = vld [vmem:[%s2680_s14 + $0x68] sm:$0xff] }
 0x25a   : > { %1357 = vmax.xlane.f32.xlu1 %v1356_v16  ;;  %v1926_v16 = vld [vmem:[%s2680_s14 + $0x70] sm:$0xff] }
 0x25b   : > { %v2777_v17 = vpop.f32.mrb[10].mxu1 }
 0x25c   : > { %v2779_v18 = vpop.f32.mrb[11].mxu1  ;;  %v1365_v19 = vsel %vm819_vm2, %v2777_v17, -inf }
 0x25d   : > { %1366 = vmax.xlane.f32.xlu0 %v1365_v19  ;;  %v1362_v20 = vsel %vm819_vm2, %v2779_v18, -inf  ;;  %v1927_v19 = vld [vmem:[%s2680_s14 + $0x78] sm:$0xff] }
 0x25e   : > { %1363 = vmax.xlane.f32.xlu1 %v1362_v20 }
 0x25f   : > { %v2785_v21 = vpop.f32.mrb[12].mxu1 }
 0x260   : > { %v2787_v22 = vpop.f32.mrb[13].mxu1  ;;  %v1371_v27 = vsel %vm819_vm2, %v2785_v21, -inf }
 0x261   : > { %v1368_v23 = vsel %vm819_vm2, %v2787_v22, -inf }
 0x262   : > { %1369 = vmax.xlane.f32.xlu1 %v1368_v23 }
 0x263   : > { %v2791_v24 = vpop.f32.mrb[14].mxu1 }
 0x264   : > { %v2793_v25 = vpop.f32.mrb[15].mxu1  ;;  %v1377_v28 = vsel %vm819_vm2, %v2791_v24, -inf }
 0x265   : > { %v1374_v26 = vsel %vm819_vm2, %v2793_v25, -inf }
 0x266   : > { %1375 = vmax.xlane.f32.xlu0 %v1374_v26  ;;  %1372 = vmax.xlane.f32.xlu1 %v1371_v27 }
 0x26a   : > { %1378 = vmax.xlane.f32.xlu0 %v1377_v28 }
 0x270   : > { %v825_v29 = vpop.xlane.xlu1 %824 }
 0x271   : > { %v845_v30 = vsub.f32 %v2728_v46, %v825_v29  ;;  %v822_v31 = vpop.xlane.xlu0 %821  ;;  %v1930_v46 = vld [vmem:[%s2941_s5 + $0x30] sm:$0xff] }
 0x272   : > { %v844_v32 = vsub.f32 %v2730_v47, %v822_v31  ;;  %v1931_v47 = vld [vmem:[%s2941_s5 + $0x38] sm:$0xff] }
 0x273   : > { %v854_v33 = vmul.f32 1.442695, %v845_v30  ;;  %v2311_v56 = vpack.c.bf16 %v1931_v47, %v1930_v46 }
 0x274   : > { %v852_v34 = vmul.f32 1.442695, %v844_v32 }
 0x275   : > { %2364 = vpow2.f32 %v854_v33  ;;  %v828_v35 = vpop.xlane.xlu0 %827 }
 0x276   : > { %2366 = vpow2.f32 %v852_v34  ;;  %v846_v36 = vsub.f32 %v2738_v51, %v828_v35 }
 0x278   : > { %v856_v37 = vmul.f32 1.442695, %v846_v36 }
 0x279   : > { %v831_v39 = vpop.xlane.xlu0 %830  ;;  %v834_v40 = vpop.xlane.xlu1 %833 }
 0x27a   : > { %2368 = vpow2.f32 %v856_v37  ;;  %v847_v41 = vsub.f32 %v2736_v50, %v831_v39  ;;  %v848_v42 = vsub.f32 %v2744_v54, %v834_v40 }
 0x27c   : > { %v858_v43 = vmul.f32 1.442695, %v847_v41  ;;  %v860_v44 = vmul.f32 1.442695, %v848_v42 }
 0x27d   : > { %v837_v38 = vpop.xlane.xlu0 %836  ;;  %v840_v45 = vpop.xlane.xlu1 %839 }
 0x27e   : > { %2370 = vpow2.f32 %v858_v43  ;;  %v849_v48 = vsub.f32 %v2742_v53, %v837_v38  ;;  %v850_v49 = vsub.f32 %v2752_v58, %v840_v45 }
 0x27f   : > { %v2365_v50 = vpop.eup %2364  ;;  %2372 = vpow2.f32 %v860_v44 }
 0x280   : > { %v2367_v51 = vpop.eup %2366  ;;  %v862_v52 = vmul.f32 1.442695, %v849_v48  ;;  %v864_v54 = vmul.f32 1.442695, %v850_v49  ;;  %v871_v55 = vsel %vm819_vm2, %v2365_v50, 0.0 }
 0x281   : > { %2139 = vmatprep.mubr.msk.f32.mxu0 %vm819_vm2, %v2367_v51  ;;  %v843_v59 = vpop.xlane.xlu0 %842  ;;  %872 = vadd.xlane.f32.xlu0 %v871_v55  ;;  %v868_v60 = vsel %vm819_vm2, %v2367_v51, 0.0 }
 0x282   : > { %2374 = vpow2.f32 %v862_v52  ;;  %v851_v61 = vsub.f32 %v2750_v57, %v843_v59  ;;  %2140 = vmatmul.mubr.msk.f32.vlgmr.msra.gmra.mrb[16].mxu0 %vm819_vm2, %v2365_v50  ;;  %869 = vadd.xlane.f32.xlu1 %v868_v60 }
 0x283   : > { %2376 = vpow2.f32 %v864_v54  ;;  %2310 = vmatpush3.bf16.msra.mxu0 %v2766_v12  ;;  %v1924_v12 = vld [vmem:[%s2680_s14 + $0x60] sm:$0xff] }
 0x284   : > { %v2369_v53 = vpop.eup %2368  ;;  %v866_v58 = vmul.f32 1.442695, %v851_v61  ;;  %2312 = vmatprep.subr.bf16.mxu0 %v2311_v56 }
 0x285   : > { %2142 = vmatprep.mubr.msk.f32.mxu0 %vm819_vm2, %v2369_v53  ;;  %v874_v62 = vsel %vm819_vm2, %v2369_v53, 0.0 }
 0x286   : > { %2378 = vpow2.f32 %v866_v58  ;;  %875 = vadd.xlane.f32.xlu1 %v874_v62 }
 0x287   : > { %2314 = vmatpush3.bf16.msra.mxu0 %v2311_v56 }
 0x288   : > { %v2371_v63 = vpop.eup %2370 }
 0x289   : > { %v2373_v0 = vpop.eup %2372  ;;  %2143 = vmatmul.mubr.msk.f32.gmra.mrb[18].mxu0 %vm819_vm2, %v2371_v63  ;;  %v877_v57 = vsel %vm819_vm2, %v2371_v63, 0.0 }
 0x28a   : > { %2145 = vmatprep.mubr.msk.f32.mxu0 %vm819_vm2, %v2373_v0  ;;  %878 = vadd.xlane.f32.xlu0 %v877_v57  ;;  %v880_v1 = vsel %vm819_vm2, %v2373_v0, 0.0 }
 0x28b   : > { %881 = vadd.xlane.f32.xlu1 %v880_v1 }
 0x28c   : > { %v2375_v2 = vpop.eup %2374 }
 0x28d   : > { %v2377_v3 = vpop.eup %2376  ;;  %2146 = vmatmul.mubr.msk.f32.gmra.mrb[20].mxu0 %vm819_vm2, %v2375_v2  ;;  %v883_v4 = vsel %vm819_vm2, %v2375_v2, 0.0 }
 0x28e   : > { %884 = vadd.xlane.f32.xlu0 %v883_v4  ;;  %2148 = vmatprep.mubr.msk.f32.mxu0 %vm819_vm2, %v2377_v3  ;;  %v886_v5 = vsel %vm819_vm2, %v2377_v3, 0.0 }
 0x28f   : > { %887 = vadd.xlane.f32.xlu1 %v886_v5 }
 0x290   : > { %v2379_v7 = vpop.eup %2378 }
 0x291   : > { %2149 = vmatmul.mubr.msk.f32.gmra.mrb[22].mxu0 %vm819_vm2, %v2379_v7  ;;  %v889_v8 = vsel %vm819_vm2, %v2379_v7, 0.0 }
 0x292   : > { %890 = vadd.xlane.f32.xlu0 %v889_v8  ;;  %2187 = vmatprep.mubr.msk.f32.mxu0 %vm528_vm0, %v1920_v6 }
 0x295   : > { %2188 = vmatmul.mubr.msk.f32.vlgmr.msra.gmra.mrb[24].mxu0 %vm528_vm0, %v1921_v9 }
 0x296   : > { %2190 = vmatprep.mubr.msk.f32.mxu0 %vm528_vm0, %v1922_v10 }
 0x299   : > { %2191 = vmatmul.mubr.msk.f32.gmra.mrb[26].mxu0 %vm528_vm0, %v1923_v11 }
 0x29a   : > { %2193 = vmatprep.mubr.msk.f32.mxu0 %vm528_vm0, %v1924_v12 }
 0x29d   : > { %2194 = vmatmul.mubr.msk.f32.gmra.mrb[28].mxu0 %vm528_vm0, %v1925_v15 }
 0x29e   : > { %2196 = vmatprep.mubr.msk.f32.mxu0 %vm528_vm0, %v1926_v16 }
 0x2a1   : > { %2197 = vmatmul.mubr.msk.f32.gmra.mrb[30].mxu0 %vm528_vm0, %v1927_v19 }
 0x2e6   : > { %v1361_v20 = vpop.xlane.xlu0 %1360 }
 0x2e7   : > { %v1381_v23 = vsub.f32 %v2769_v13, %v1361_v20  ;;  %v1358_v26 = vpop.xlane.xlu1 %1357 }
 0x2e8   : > { %v1380_v27 = vsub.f32 %v2771_v14, %v1358_v26 }
 0x2e9   : > { %v1390_v28 = vmul.f32 1.442695, %v1381_v23 }
 0x2ea   : > { %v1388_v29 = vmul.f32 1.442695, %v1380_v27  ;;  %v1367_v30 = vpop.xlane.xlu0 %1366 }
 0x2eb   : > { %2380 = vpow2.f32 %v1390_v28  ;;  %v1383_v31 = vsub.f32 %v2777_v17, %v1367_v30  ;;  %v1364_v32 = vpop.xlane.xlu1 %1363 }
 0x2ec   : > { %2382 = vpow2.f32 %v1388_v29  ;;  %v1382_v33 = vsub.f32 %v2779_v18, %v1364_v32 }
 0x2ed   : > { %v1394_v34 = vmul.f32 1.442695, %v1383_v31 }
 0x2ee   : > { %v1392_v35 = vmul.f32 1.442695, %v1382_v33 }
 0x2ef   : > { %2384 = vpow2.f32 %v1394_v34  ;;  %v1370_v36 = vpop.xlane.xlu1 %1369 }
 0x2f0   : > { %2386 = vpow2.f32 %v1392_v35  ;;  %v1384_v13 = vsub.f32 %v2787_v22, %v1370_v36 }
 0x2f2   : > { %v1396_v37 = vmul.f32 1.442695, %v1384_v13 }
 0x2f3   : > { %v1376_v39 = vpop.xlane.xlu0 %1375  ;;  %v1373_v14 = vpop.xlane.xlu1 %1372 }
 0x2f4   : > { %2388 = vpow2.f32 %v1396_v37  ;;  %v1386_v40 = vsub.f32 %v2793_v25, %v1376_v39  ;;  %v1385_v41 = vsub.f32 %v2785_v21, %v1373_v14 }
 0x2f5   : > { %v2855_v17 = vpop.eup %2380 }
 0x2f6   : > { %v2383_v42 = vpop.eup %2382  ;;  %v1400_v43 = vmul.f32 1.442695, %v1386_v40  ;;  %v1398_v18 = vmul.f32 1.442695, %v1385_v41  ;;  %v1407_v44 = vsel %vm819_vm2, %v2855_v17, 0.0 }
 0x2f7   : > { %1408 = vadd.xlane.f32.xlu0 %v1407_v44  ;;  %v1379_v38 = vpop.xlane.xlu0 %1378  ;;  %2215 = vmatprep.mubr.msk.f32.mxu0 %vm819_vm2, %v2383_v42  ;;  %v1404_v22 = vsel %vm819_vm2, %v2383_v42, 0.0 }
 0x2f8   : > { %2390 = vpow2.f32 %v1400_v43  ;;  %v1387_v45 = vsub.f32 %v2791_v24, %v1379_v38  ;;  %1405 = vadd.xlane.f32.xlu1 %v1404_v22 }
 0x2f9   : > { %v2385_v25 = vpop.eup %2384  ;;  %2392 = vpow2.f32 %v1398_v18 }
 0x2fa   : > { %v2387_v21 = vpop.eup %2386  ;;  %v1402_v46 = vmul.f32 1.442695, %v1387_v45  ;;  %v1413_v47 = vsel %vm819_vm2, %v2385_v25, 0.0 }
 0x2fb   : > { %1414 = vadd.xlane.f32.xlu0 %v1413_v47  ;;  %v1410_v48 = vsel %vm819_vm2, %v2387_v21, 0.0 }
 0x2fc   : > { %2394 = vpow2.f32 %v1402_v46  ;;  %1411 = vadd.xlane.f32.xlu1 %v1410_v48  ;;  %v1948_v48 = vld [vmem:[%s2942_s6] ss:$0 sm:$0xff] }
 0x2fe   : > { %v2389_v49 = vpop.eup %2388 }
 0x2ff   : > { %v1416_v50 = vsel %vm819_vm2, %v2389_v49, 0.0 }
 0x300   : > { %1417 = vadd.xlane.f32.xlu1 %v1416_v50 }
 0x302   : > { %v2391_v51 = vpop.eup %2390 }
 0x303   : > { %v2393_v52 = vpop.eup %2392  ;;  %2224 = vmatprep.mubr.msk.f32.mxu1 %vm819_vm2, %v2391_v51  ;;  %v1422_v24 = vsel %vm819_vm2, %v2391_v51, 0.0 }
 0x304   : > { %1423 = vadd.xlane.f32.xlu1 %v1422_v24  ;;  %v1419_v54 = vsel %vm819_vm2, %v2393_v52, 0.0 }
 0x305   : > { %1420 = vadd.xlane.f32.xlu0 %v1419_v54 }
 0x306   : > { %v2395_v55 = vpop.eup %2394 }
 0x307   : > { %v1425_v56 = vsel %vm819_vm2, %v2395_v55, 0.0 }
 0x309   : > { %1426 = vadd.xlane.f32.xlu0 %v1425_v56 }
 0x30e   : > { %v873_v15 = vpop.xlane.xlu0 %872 }
 0x30f   : > { %v870_v12 = vpop.xlane.xlu1 %869  ;;  %2396 = vrcp.f32 %v873_v15 }
 0x310   : > { %2398 = vrcp.f32 %v870_v12 }
 0x313   : > { %v876_v16 = vpop.xlane.xlu1 %875 }
 0x317   : > { %v879_v19 = vpop.xlane.xlu0 %878 }
 0x318   : > { %v882_v20 = vpop.xlane.xlu1 %881 }
 0x319   : > { %v2397_v36 = vpop.eup %2396 }
 0x31a   : > { %v2399_v13 = vpop.eup %2398 }
 0x31b   : > { %v885_v23 = vpop.xlane.xlu0 %884 }
 0x31c   : > { %v888_v26 = vpop.xlane.xlu1 %887 }
 0x31d   : > { %2400 = vrcp.f32 %v888_v26 }
 0x31f   : > { %v891_v27 = vpop.xlane.xlu0 %890 }
 0x320   : > { %2402 = vrcp.f32 %v891_v27 }
 0x327   : > { %v2401_v37 = vpop.eup %2400 }
 0x32a   : > { %v2403_v39 = vpop.eup %2402 }
 0x355   : > { %v2869_v59 = vpop.f32.mrb[16].mxu0 }
 0x356   : > { %v2871_v60 = vpop.f32.mrb[17].mxu0  ;;  %v1171_v18 = vmul.f32 %v2397_v36, %v2869_v59 }
 0x357   : > { %v1170_v46 = vmul.f32 %v2399_v13, %v2871_v60 }
 0x35c   : > { %v2873_v61 = vpop.f32.mrb[18].mxu0 }
 0x35d   : > { %v2875_v53 = vpop.f32.mrb[19].mxu0 }
 0x360   : > { %v2877_v58 = vpop.f32.mrb[20].mxu0 }
 0x361   : > { %v2879_v62 = vpop.f32.mrb[21].mxu0 }
 0x364   : > { %v2881_v63 = vpop.f32.mrb[22].mxu0 }
 0x365   : > { %v2883_v0 = vpop.f32.mrb[23].mxu0  ;;  %v1177_v44 = vmul.f32 %v2403_v39, %v2881_v63 }
 0x366   : > { %v1176_v47 = vmul.f32 %v2401_v37, %v2883_v0 }
 0x368   : > { %v2189_v57 = vpop.f32.mrb[24].mxu0 }
 0x369   : > { %v1532_v1 = vpop.f32.mrb[25].mxu0 }
 0x36a   : > { %v2315_v2 = vpack.c.bf16 %v2189_v57, %v1532_v1 }
 0x36c   : > { %v2192_v3 = vpop.f32.mrb[26].mxu0  ;;  %2316 = vmatprep.subr.bf16.mxu0 %v2315_v2  ;;  %2331 = vmatprep.subr.bf16.mxu1 %v2315_v2 }
 0x36d   : > { %v1542_v4 = vpop.f32.mrb[27].mxu0  ;;  %2318 = vmatpush3.bf16.msra.mxu0 %v2315_v2  ;;  %2335 = vmatpush3.bf16.msra.mxu1 %v2315_v2 }
 0x36e   : > { %v2319_v5 = vpack.c.bf16 %v2192_v3, %v1542_v4 }
 0x370   : > { %v2195_v6 = vpop.f32.mrb[28].mxu0  ;;  %2320 = vmatprep.subr.bf16.mxu0 %v2319_v5  ;;  %2332 = vmatprep.subr.bf16.mxu1 %v2319_v5 }
 0x371   : > { %v1552_v7 = vpop.f32.mrb[29].mxu0  ;;  %2322 = vmatpush3.bf16.msra.mxu0 %v2319_v5  ;;  %2336 = vmatpush3.bf16.msra.mxu1 %v2319_v5 }
 0x372   : > { %v2323_v8 = vpack.c.bf16 %v2195_v6, %v1552_v7 }
 0x374   : > { %v2198_v9 = vpop.f32.mrb[30].mxu0  ;;  %2324 = vmatprep.subr.bf16.mxu0 %v2323_v8  ;;  %2333 = vmatprep.subr.bf16.mxu1 %v2323_v8 }
 0x375   : > { %v1562_v10 = vpop.f32.mrb[31].mxu0  ;;  %2326 = vmatpush3.bf16.msra.mxu0 %v2323_v8  ;;  %2337 = vmatpush3.bf16.msra.mxu1 %v2323_v8 }
 0x376   : > { %v2327_v11 = vpack.c.bf16 %v2198_v9, %v1562_v10 }
 0x378   : > { %2328 = vmatprep.subr.bf16.mxu0 %v2327_v11  ;;  %2334 = vmatprep.subr.bf16.mxu1 %v2327_v11 }
 0x379   : > { %2330 = vmatpush3.bf16.msra.mxu0 %v2327_v11  ;;  %2338 = vmatpush3.bf16.msra.mxu1 %v2327_v11 }
 0x37c   : > { %2216 = vmatmul.mubr.msk.f32.vlgmr.msra.gmra.mrb[32].mxu0 %vm819_vm2, %v2855_v17  ;;  %2225 = vmatmul.mubr.msk.f32.vlgmr.msra.gmra.mrb[16].mxu1 %vm819_vm2, %v2395_v55 }
 0x37d   : > { %2218 = vmatprep.mubr.msk.f32.mxu0 %vm819_vm2, %v2387_v21 }
 0x380   : > { %2219 = vmatmul.mubr.msk.f32.gmra.mrb[34].mxu0 %vm819_vm2, %v2385_v25 }
 0x381   : > { %2221 = vmatprep.mubr.msk.f32.mxu0 %vm819_vm2, %v2389_v49 }
 0x384   : > { %2222 = vmatmul.mubr.msk.f32.gmra.mrb[36].mxu0 %vm819_vm2, %v2393_v52  ;;  %v1409_v29 = vpop.xlane.xlu0 %1408 }
 0x385   : > { %v1406_v28 = vpop.xlane.xlu1 %1405  ;;  %2404 = vrcp.f32 %v1409_v29 }
 0x386   : > { %2406 = vrcp.f32 %v1406_v28 }
 0x388   : > { %v1415_v31 = vpop.xlane.xlu0 %1414 }
 0x389   : > { %v1412_v30 = vpop.xlane.xlu1 %1411 }
 0x38d   : > { %v1418_v33 = vpop.xlane.xlu1 %1417 }
 0x38f   : > { %v2405_v14 = vpop.eup %2404 }
 0x390   : > { %v2407_v40 = vpop.eup %2406 }
 0x391   : > { %v1424_v35 = vpop.xlane.xlu1 %1423 }
 0x392   : > { %v1421_v32 = vpop.xlane.xlu0 %1420 }
 0x396   : > { %v1427_v34 = vpop.xlane.xlu0 %1426 }
 0x397   : > { %2408 = vrcp.f32 %v1427_v34 }
 0x398   : > { %2410 = vrcp.f32 %v1424_v35 }
 0x399   : > { %2412 = vrcp.f32 %v876_v16 }
 0x39a   : > { %2414 = vrcp.f32 %v879_v19 }
 0x39b   : > { %2416 = vrcp.f32 %v1415_v31 }
 0x39c   : > { %2418 = vrcp.f32 %v1412_v30 }
 0x39d   : > { %2420 = vrcp.f32 %v882_v20 }
 0x39e   : > { %2422 = vrcp.f32 %v885_v23 }
 0x39f   : > { %2424 = vrcp.f32 %v1421_v32 }
 0x3a0   : > { %2426 = vrcp.f32 %v1418_v33 }
 0x3a1   : > { %v2409_v41 = vpop.eup %2408 }
 0x3a2   : > { %v2411_v43 = vpop.eup %2410 }
 0x3a3   : > { %v2413_v21 = vpop.eup %2412 }
 0x3a4   : > { %v2415_v51 = vpop.eup %2414  ;;  %v1172_v4 = vmul.f32 %v2413_v21, %v2875_v53 }
 0x3a5   : > { %v2417_v54 = vpop.eup %2416  ;;  %v1173_v63 = vmul.f32 %v2415_v51, %v2873_v61 }
 0x3a6   : > { %v2419_v60 = vpop.eup %2418 }
 0x3a7   : > { %v2421_v3 = vpop.eup %2420 }
 0x3a8   : > { %v2423_v8 = vpop.eup %2422  ;;  %v1174_v20 = vmul.f32 %v2421_v3, %v2879_v62 }
 0x3a9   : > { %v2425_v61 = vpop.eup %2424  ;;  %v1175_v12 = vmul.f32 %v2423_v8, %v2877_v58 }
 0x3aa   : > { %v2427_v53 = vpop.eup %2426 }
 0x44f   : > { %v2217_v17 = vpop.f32.mrb[32].mxu0  ;;  %v2226_v42 = vpop.f32.mrb[16].mxu1 }
 0x450   : > { %v1709_v38 = vmul.f32 %v2405_v14, %v2217_v17  ;;  %v1715_v22 = vmul.f32 %v2409_v41, %v2226_v42  ;;  %v1661_v45 = vpop.f32.mrb[33].mxu0  ;;  %v1691_v25 = vpop.f32.mrb[17].mxu1 }
 0x451   : > { %v1708_v49 = vmul.f32 %v2407_v40, %v1661_v45  ;;  %v1714_v50 = vmul.f32 %v2411_v43, %v1691_v25 }
 0x452   : > { %v1717_v52 = vadd.f32 %v1709_v38, %v1171_v18  ;;  %v1723_v24 = vadd.f32 %v1715_v22, %v1177_v44 }
 0x453   : > { %v1716_v55 = vadd.f32 %v1708_v49, %v1170_v46  ;;  %v1722_v56 = vadd.f32 %v1714_v50, %v1176_v47  ;;  %v2220_v59 = vpop.f32.mrb[34].mxu0 }
 0x454   : > { %v1732_v0 = vadd.f32 %v1948_v48, %v1717_v52  ;;  %v1738_v57 = vadd.f32 %v1948_v48, %v1723_v24  ;;  %v1711_v1 = vmul.f32 %v2417_v54, %v2220_v59  ;;  %v1671_v2 = vpop.f32.mrb[35].mxu0 }
 0x455   : > { %v1731_v5 = vadd.f32 %v1948_v48, %v1716_v55  ;;  %v1737_v6 = vadd.f32 %v1948_v48, %v1722_v56  ;;  %v1710_v7 = vmul.f32 %v2419_v60, %v1671_v2 }
 0x456   : > { %1740 = vst.msk [vmem:[%s2904_s9 + $0x8] sm:$0xff] %vm528_vm0, %v1732_v0  ;;  %1746 = vst.msk [vmem:[%s2904_s9 + $0x38] sm:$0xff] %vm528_vm0, %v1738_v57  ;;  %v1719_v9 = vadd.f32 %v1711_v1, %v1173_v63 }
 0x457   : > { %1739 = vst.msk [vmem:[%s2904_s9] sm:$0xff] %vm528_vm0, %v1731_v5  ;;  %1745 = vst.msk [vmem:[%s2904_s9 + $0x30] sm:$0xff] %vm528_vm0, %v1737_v6  ;;  %v1718_v10 = vadd.f32 %v1710_v7, %v1172_v4  ;;  %v2223_v11 = vpop.f32.mrb[36].mxu0 }
 0x458   : > { %v1734_v15 = vadd.f32 %v1948_v48, %v1719_v9  ;;  %v1713_v16 = vmul.f32 %v2425_v61, %v2223_v11  ;;  %v1681_v19 = vpop.f32.mrb[37].mxu0 }
 0x459   : > { %v1733_v23 = vadd.f32 %v1948_v48, %v1718_v10  ;;  %v1712_v26 = vmul.f32 %v2427_v53, %v1681_v19 }
 0x45a   : > { %1742 = vst.msk [vmem:[%s2904_s9 + $0x18] sm:$0xff] %vm528_vm0, %v1734_v15  ;;  %v1721_v27 = vadd.f32 %v1713_v16, %v1175_v12 }
 0x45b   : > { %1741 = vst.msk [vmem:[%s2904_s9 + $0x10] sm:$0xff] %vm528_vm0, %v1733_v23  ;;  %v1720_v28 = vadd.f32 %v1712_v26, %v1174_v20 }
 0x45c   : > { %v1736_v29 = vadd.f32 %v1948_v48, %v1721_v27 }
 0x45d   : > { %v1735_v30 = vadd.f32 %v1948_v48, %v1720_v28 }
 0x45e   : > { %1744 = vst.msk [vmem:[%s2904_s9 + $0x28] sm:$0xff] %vm528_vm0, %v1736_v29 }
 0x45f   : > { %1743 = vst.msk [vmem:[%s2904_s9 + $0x20] sm:$0xff] %vm528_vm0, %v1735_v30 }
 0x460 PF: > { %p14_p9 = scmp.ge.s32.totalorder %s2510_s28, 4   ;;  %s2947_s24 = smov %s2446_s25 }
 0x461   : > { %s2948_s25 = smov %s2519_s8  ;;  %s2949_s26 = smov %s2510_s28 }
 0x462   :  { %16 = sbr.rel (!%p14_p9) target bundleno = 2 (0x2), region = 173 }

</bundles_post_ra>
